<compile_context>
chip_gen: v7x
topology: tpu7x:2x2x1
jax: 0.10.0
libtpu: 0.0.40
codegen_flags: <defaults>
</compile_context>

<pallas_src>
import functools
import math

import jax
import jax.numpy as jnp
from jax.experimental import pallas as pl
from jax.experimental.pallas import tpu as pltpu

NUM_GROUPS = 12
EPS = 1e-6
LANE = 128


def _round_up(a, m):
    return (a + m - 1) // m * m


def _vmem_limit_bytes(working_set_bytes):
    """Double-buffered working set + headroom, clamped to the chip's VMEM."""
    try:
        cap = pltpu.get_tpu_info().vmem_capacity_bytes
    except Exception:
        cap = 64 << 20                       # v7x per-TensorCore: safe lower bound
    want = max(32 << 20, 2 * working_set_bytes + (16 << 20))
    return int(min(int(0.85 * cap), want))


# --------------------------------------------------------------------------
# Kernel 1: GroupNorm affine (precomputed per-batch scale/shift) + fused QKV
# projection.  grid = (B, N//tn); writes one bf16 (1, tn, 3Cp) slab per step.
# --------------------------------------------------------------------------
def _gn_qkv_kernel(x_ref, scale_ref, shift_ref, wqkv_ref, bqkv_ref, qkv_ref):
    x = x_ref[0]                                        # (tn, Cp) f32
    h = x * scale_ref[0] + shift_ref[0]                 # padded lanes stay 0
    qkv = jnp.dot(h.astype(jnp.bfloat16), wqkv_ref[...],
                  preferred_element_type=jnp.float32) + bqkv_ref[...]
    qkv_ref[0] = qkv.astype(jnp.bfloat16)               # (tn, 3Cp) bf16


# --------------------------------------------------------------------------
# Kernel 2: flash-style attention over the fused bf16 qkv slab + proj_out +
# residual.  grid = (B, N//tq "parallel", N//tk "arbitrary").
# --------------------------------------------------------------------------
def _flash_attn_proj_kernel(x_ref, q_ref, k_ref, v_ref, wp_ref, bp_ref,
                            o_ref, m_sc, l_sc, acc_sc, *, sum_lane):
    ki = pl.program_id(2)

    @pl.when(ki == 0)
    def _init():
        m_sc[...] = jnp.full(m_sc.shape, -jnp.inf, jnp.float32)
        l_sc[...] = jnp.zeros(l_sc.shape, jnp.float32)
        acc_sc[...] = jnp.zeros(acc_sc.shape, jnp.float32)

    q = q_ref[0]                                        # (tq, Cp) bf16 (scale folded in)
    k = k_ref[0]                                        # (tk, Cp) bf16
    v = v_ref[0]                                        # (tk, Cp) bf16

    s = jax.lax.dot_general(q, k, (((1,), (1,)), ((), ())),
                            preferred_element_type=jnp.float32)      # (tq, tk)

    m_prev = m_sc[...]
    m_new = jnp.maximum(m_prev, jnp.max(s, axis=-1, keepdims=True))
    alpha = jnp.exp(m_prev - m_new)
    p = jnp.exp(s - m_new)
    if sum_lane is None:
        # no spare padded V lane -> explicit running row-sum
        l_sc[...] = alpha * l_sc[...] + jnp.sum(p, axis=-1, keepdims=True)
    acc_sc[...] = alpha * acc_sc[...] + jnp.dot(
        p.astype(jnp.bfloat16), v, preferred_element_type=jnp.float32)
    m_sc[...] = m_new

    @pl.when(ki == pl.num_programs(2) - 1)
    def _finalize():
        if sum_lane is None:
            l = l_sc[...]
        else:
            # row-sum was folded into the P.V matmul via the all-ones V lane
            l = acc_sc[:, sum_lane:sum_lane + 1]
        out = acc_sc[...] * pl.reciprocal(l, approx=True)            # (tq, Cp)
        proj = jnp.dot(out.astype(jnp.bfloat16), wp_ref[...],
                       preferred_element_type=jnp.float32) + bp_ref[...]
        o_ref[0] = x_ref[0] + proj


# --------------------------------------------------------------------------
# Wrapper
# --------------------------------------------------------------------------
def memory_efficient_attn_block(x, params, *, num_groups=NUM_GROUPS,
                                tn=512, tq=512, tk=1024):
    """x: (B, C, H, W) float32 NCHW. params: dict of conv/norm parameters."""
    B, C, H, W = x.shape
    N = H * W
    assert C % num_groups == 0
    G = num_groups
    cg = C // G
    Cp = _round_up(C, LANE)                     # lane-dense channel dim

    tn = min(tn, N)
    tq = min(tq, N)
    tk = min(tk, N)
    assert N % tn == 0 and N % tq == 0 and N % tk == 0, \
        "spatial size must tile by (tn, tq, tk)"
    assert tn % 8 == 0 and tq % 8 == 0 and tk % 8 == 0

    f32 = jnp.float32

    # ---- GroupNorm statistics: tiny per-(batch, group) XLA reduction ----
    xg = x.astype(f32).reshape(B, G, cg * H * W)
    mean = xg.mean(axis=-1)                                     # (B, G)
    var = xg.var(axis=-1)                                       # two-pass, unbiased-safe
    rstd = jax.lax.rsqrt(var + EPS)
    gamma = params["gamma"].astype(f32)
    beta = params["beta"].astype(f32)
    scale_bc = jnp.repeat(rstd, cg, axis=1) * gamma[None, :]     # (B, C)
    shift_bc = beta[None, :] - jnp.repeat(mean, cg, axis=1) * scale_bc
    scale_bc = jnp.pad(scale_bc, ((0, 0), (0, Cp - C))).reshape(B, 1, Cp)
    shift_bc = jnp.pad(shift_bc, ((0, 0), (0, Cp - C))).reshape(B, 1, Cp)

    # ---- layout: NCHW -> (B, N, Cp); pad is a no-op when C % 128 == 0 ----
    x_bnc = jnp.transpose(x.astype(f32).reshape(B, C, N), (0, 2, 1))   # (B, N, C)
    x_p = jnp.pad(x_bnc, ((0, 0), (0, 0), (0, Cp - C)))                # (B, N, Cp)

    def pad_vec(v):                                 # (C,) -> (1, Cp)
        return jnp.pad(v.reshape(1, C).astype(f32), ((0, 0), (0, Cp - C)))

    def pad_w(w):   # (C_out, C_in, 1, 1) -> (Cp_in, Cp_out), ready for h @ W
        w2 = w.reshape(C, C).T.astype(f32)
        return jnp.pad(w2, ((0, Cp - C), (0, Cp - C)))

    # fused QKV weights (bf16); softmax 1/sqrt(C) folded into q weights/bias
    attn_scale = 1.0 / math.sqrt(C)
    wqkv = jnp.concatenate([pad_w(params["wq"]) * attn_scale,
                            pad_w(params["wk"]),
                            pad_w(params["wv"])], axis=1).astype(jnp.bfloat16)
    bqkv = jnp.concatenate([pad_vec(params["bq"]) * attn_scale,
                            pad_vec(params["bk"]),
                            pad_vec(params["bv"])], axis=1)            # (1, 3Cp) f32
    # Fold the softmax row-sum into P.V: if a padded V lane exists, make it an
    # all-ones column (bias 1.0; its weight rows/cols are already zero).
    sum_lane = C if Cp > C else None
    if sum_lane is not None:
        bqkv = bqkv.at[0, 2 * Cp + sum_lane].set(1.0)

    wp = pad_w(params["wp"]).astype(jnp.bfloat16)
    bp = pad_vec(params["bp"])

    # ---- stage 1: GroupNorm affine + fused QKV (bf16 slab), N-tiled ----
    ws1 = (4 * tn * Cp + 2 * tn * 3 * Cp + 2 * Cp * 3 * Cp
           + 4 * 3 * Cp + 8 * Cp + 4 * tn * 3 * Cp)
    qkv = pl.pallas_call(
        _gn_qkv_kernel,
        out_shape=jax.ShapeDtypeStruct((B, N, 3 * Cp), jnp.bfloat16),
        grid=(B, N // tn),
        in_specs=[
            pl.BlockSpec((1, tn, Cp), lambda b, n: (b, n, 0)),      # x
            pl.BlockSpec((1, 1, Cp), lambda b, n: (b, 0, 0)),       # scale
            pl.BlockSpec((1, 1, Cp), lambda b, n: (b, 0, 0)),       # shift
            pl.BlockSpec((Cp, 3 * Cp), lambda b, n: (0, 0)),        # wqkv (bf16)
            pl.BlockSpec((1, 3 * Cp), lambda b, n: (0, 0)),         # bqkv
        ],
        out_specs=pl.BlockSpec((1, tn, 3 * Cp), lambda b, n: (b, n, 0)),
        compiler_params=pltpu.CompilerParams(
            dimension_semantics=("parallel", "parallel"),
            vmem_limit_bytes=_vmem_limit_bytes(ws1)),
    )(x_p, scale_bc, shift_bc, wqkv, bqkv)

    # ---- stage 2: flash attention + proj_out + residual ----
    ws2 = (8 * tq * Cp + 2 * tq * Cp + 4 * tk * Cp + 2 * Cp * Cp
           + 4 * Cp + 4 * (2 * tq + tq * Cp) + 8 * tq * tk)
    out_p = pl.pallas_call(
        functools.partial(_flash_attn_proj_kernel, sum_lane=sum_lane),
        out_shape=jax.ShapeDtypeStruct((B, N, Cp), jnp.float32),
        grid=(B, N // tq, N // tk),
        in_specs=[
            pl.BlockSpec((1, tq, Cp), lambda b, qi, ki: (b, qi, 0)),  # x (resid)
            pl.BlockSpec((1, tq, Cp), lambda b, qi, ki: (b, qi, 0)),  # q slice
            pl.BlockSpec((1, tk, Cp), lambda b, qi, ki: (b, ki, 1)),  # k slice
            pl.BlockSpec((1, tk, Cp), lambda b, qi, ki: (b, ki, 2)),  # v slice
            pl.BlockSpec((Cp, Cp), lambda b, qi, ki: (0, 0)),         # wp (bf16)
            pl.BlockSpec((1, Cp), lambda b, qi, ki: (0, 0)),          # bp
        ],
        out_specs=pl.BlockSpec((1, tq, Cp), lambda b, qi, ki: (b, qi, 0)),
        scratch_shapes=[
            pltpu.VMEM((tq, 1), jnp.float32),      # running max
            pltpu.VMEM((tq, 1), jnp.float32),      # running sum (unused if folded)
            pltpu.VMEM((tq, Cp), jnp.float32),     # output accumulator
        ],
        compiler_params=pltpu.CompilerParams(
            dimension_semantics=("parallel", "parallel", "arbitrary"),
            vmem_limit_bytes=_vmem_limit_bytes(ws2)),
    )(x_p, qkv, qkv, qkv, wp, bp)

    out = out_p[:, :, :C]                          # drop channel pad (no-op if Cp==C)
    return jnp.transpose(out, (0, 2, 1)).reshape(B, C, H, W)


# --------------------------------------------------------------------------
# Pure-JAX reference matching the PyTorch forward semantics
# --------------------------------------------------------------------------
def reference(x, params, num_groups=NUM_GROUPS):
    B, C, H, W = x.shape
    G = num_groups
    xg = x.reshape(B, G, (C // G) * H * W)
    mean = xg.mean(-1, keepdims=True)
    var = xg.var(-1, keepdims=True)
    h = ((xg - mean) / jnp.sqrt(var + EPS)).reshape(B, C, H, W)
    h = h * params["gamma"][None, :, None, None] + params["beta"][None, :, None, None]
    hb = jnp.transpose(h.reshape(B, C, H * W), (0, 2, 1))            # (B, N, C)

    def conv1x1(t, w, b):
        return t @ w.reshape(C, C).T + b

    q = conv1x1(hb, params["wq"], params["bq"])
    k = conv1x1(hb, params["wk"], params["bk"])
    v = conv1x1(hb, params["wv"], params["bv"])
    s = jnp.einsum("bnc,bmc->bnm", q, k) / jnp.sqrt(C)
    p = jax.nn.softmax(s, axis=-1)
    o = jnp.einsum("bnm,bmc->bnc", p, v)
    o = conv1x1(o, params["wp"], params["bp"])
    o = jnp.transpose(o, (0, 2, 1)).reshape(B, C, H, W)
    return x + o


def make_params(key, C):
    keys = jax.random.split(key, 10)
    std = 0.5 / math.sqrt(C)

    def w(k):
        return std * jax.random.normal(k, (C, C, 1, 1), jnp.float32)

    def b(k):
        return std * jax.random.normal(k, (C,), jnp.float32)

    return {
        "gamma": 1.0 + 0.1 * jax.random.normal(keys[0], (C,), jnp.float32),
        "beta": 0.1 * jax.random.normal(keys[1], (C,), jnp.float32),
        "wq": w(keys[2]), "bq": b(keys[3]),
        "wk": w(keys[4]), "bk": b(keys[5]),
        "wv": w(keys[6]), "bv": b(keys[7]),
        "wp": w(keys[8]), "bp": b(keys[9]),
    }


if __name__ == "__main__":
    key = jax.random.PRNGKey(0)
    k_x1, k_p1, k_x2, k_p2 = jax.random.split(key, 4)

    # ---- config 1: C < 128 (padded lanes; row-sum folded into ones V lane) ----
    B, C, H, W = 2, 24, 16, 16                   # C divisible by num_groups=12
    x = jax.random.normal(k_x1, (B, C, H, W), jnp.float32)
    params = make_params(k_p1, C)
    y_ref = reference(x, params)

    # default tiles (clamped to N)
    y = jax.block_until_ready(memory_efficient_attn_block(x, params))
    assert y.shape == (B, C, H, W)
    assert jnp.allclose(y, y_ref, rtol=4e-2, atol=4e-2), (
        float(jnp.max(jnp.abs(y - y_ref))))

    # small tiles: exercises N-tiled stage 1 and the multi-step online softmax
    y_t = jax.block_until_ready(
        memory_efficient_attn_block(x, params, tn=128, tq=128, tk=64))
    assert jnp.allclose(y_t, y_ref, rtol=4e-2, atol=4e-2), (
        float(jnp.max(jnp.abs(y_t - y_ref))))

    # ---- config 2: C a multiple of 128 (no pad; explicit running-sum path) ----
    B2, C2, H2, W2 = 1, 384, 16, 16
    x2 = jax.random.normal(k_x2, (B2, C2, H2, W2), jnp.float32)
    params2 = make_params(k_p2, C2)
    y2_ref = reference(x2, params2)
    y2 = jax.block_until_ready(
        memory_efficient_attn_block(x2, params2, tn=256, tq=64, tk=128))
    assert jnp.allclose(y2, y2_ref, rtol=4e-2, atol=4e-2), (
        float(jnp.max(jnp.abs(y2 - y2_ref))))

    print("KERNEL_OK")
</pallas_src>

<mosaic_0001>
module attributes {stable_mosaic.version = 11 : i64} {
  func.func @_gn_qkv_kernel(%arg0: i32, %arg1: i32, %arg2: memref<1x256x128xf32, #tpu.memory_space<vmem>>, %arg3: memref<1x1x128xf32, #tpu.memory_space<vmem>>, %arg4: memref<1x1x128xf32, #tpu.memory_space<vmem>>, %arg5: memref<128x384xbf16, #tpu.memory_space<vmem>>, %arg6: memref<1x384xf32, #tpu.memory_space<vmem>>, %arg7: memref<1x256x384xbf16, #tpu.memory_space<vmem>>) attributes {dimension_semantics = [#tpu.dimension_semantics<parallel>, #tpu.dimension_semantics<parallel>], iteration_bounds = array<i64: 2, 1>, scalar_prefetch = 0 : i64, scratch_operands = 0 : i64, tpu.core_type = #tpu.core_type<tc>, window_params = [{transform_indices = @transform_0, window_bounds = array<i64: 1, 256, 128>}, {transform_indices = @transform_1, window_bounds = array<i64: 1, 1, 128>}, {transform_indices = @transform_2, window_bounds = array<i64: 1, 1, 128>}, {pipeline_mode = #tpu.pipeline_mode<synchronous>, transform_indices = @transform_3, window_bounds = array<i64: 128, 384>}, {pipeline_mode = #tpu.pipeline_mode<synchronous>, transform_indices = @transform_4, window_bounds = array<i64: 1, 384>}, {transform_indices = @transform_5, window_bounds = array<i64: 1, 256, 384>}]} {
    %c0 = arith.constant 0 : index
    %c0_0 = arith.constant 0 : index
    %c0_1 = arith.constant 0 : index
    %0 = vector.load %arg2[%c0, %c0_0, %c0_1] : memref<1x256x128xf32, #tpu.memory_space<vmem>>, vector<1x256x128xf32>
    %1 = vector.shape_cast %0 : vector<1x256x128xf32> to vector<256x128xf32>
    %c0_2 = arith.constant 0 : index
    %c0_3 = arith.constant 0 : index
    %c0_4 = arith.constant 0 : index
    %2 = vector.load %arg3[%c0_2, %c0_3, %c0_4] : memref<1x1x128xf32, #tpu.memory_space<vmem>>, vector<1x1x128xf32>
    %3 = vector.shape_cast %2 : vector<1x1x128xf32> to vector<1x128xf32>
    %4 = vector.broadcast %3 : vector<1x128xf32> to vector<256x128xf32>
    %5 = arith.mulf %1, %4 : vector<256x128xf32>
    %c0_5 = arith.constant 0 : index
    %c0_6 = arith.constant 0 : index
    %c0_7 = arith.constant 0 : index
    %6 = vector.load %arg4[%c0_5, %c0_6, %c0_7] : memref<1x1x128xf32, #tpu.memory_space<vmem>>, vector<1x1x128xf32>
    %7 = vector.shape_cast %6 : vector<1x1x128xf32> to vector<1x128xf32>
    %8 = vector.broadcast %7 : vector<1x128xf32> to vector<256x128xf32>
    %9 = arith.addf %5, %8 : vector<256x128xf32>
    %10 = arith.truncf %9 : vector<256x128xf32> to vector<256x128xbf16>
    %c0_8 = arith.constant 0 : index
    %c0_9 = arith.constant 0 : index
    %11 = vector.load %arg5[%c0_8, %c0_9] : memref<128x384xbf16, #tpu.memory_space<vmem>>, vector<128x384xbf16>
    %cst = arith.constant dense<0.000000e+00> : vector<256x384xf32>
    %12 = tpu.matmul %10, %11, %cst {dimension_numbers = #tpu.dot_dimension_numbers<[1], [0], [0], [1], [0, 0, 1, 1], [], []>} : vector<256x128xbf16>, vector<128x384xbf16>, vector<256x384xf32> -> vector<256x384xf32>
    %c0_10 = arith.constant 0 : index
    %c0_11 = arith.constant 0 : index
    %13 = vector.load %arg6[%c0_10, %c0_11] : memref<1x384xf32, #tpu.memory_space<vmem>>, vector<1x384xf32>
    %14 = vector.broadcast %13 : vector<1x384xf32> to vector<256x384xf32>
    %15 = arith.addf %12, %14 : vector<256x384xf32>
    %16 = arith.truncf %15 : vector<256x384xf32> to vector<256x384xbf16>
    %c0_12 = arith.constant 0 : index
    %c0_13 = arith.constant 0 : index
    %c0_14 = arith.constant 0 : index
    %17 = vector.load %arg7[%c0_12, %c0_13, %c0_14] : memref<1x256x384xbf16, #tpu.memory_space<vmem>>, vector<1x256x384xbf16>
    %18 = vector.shape_cast %17 : vector<1x256x384xbf16> to vector<256x384xbf16>
    %19 = vector.shape_cast %16 : vector<256x384xbf16> to vector<1x256x384xbf16>
    tpu.vector_store %arg7[%c0_12, %c0_13, %c0_14], %19 {strides = array<i32>} : memref<1x256x384xbf16, #tpu.memory_space<vmem>>, vector<1x256x384xbf16>,
    return
  }
  func.func @transform_0(%arg0: i32, %arg1: i32) -> (i32, i32, i32) {
    %c0_i32 = arith.constant 0 : i32
    %c0_i32_0 = arith.constant 0 : i32
    return %arg0, %arg1, %c0_i32 : i32, i32, i32
  }
  func.func @transform_1(%arg0: i32, %arg1: i32) -> (i32, i32, i32) {
    %c0_i32 = arith.constant 0 : i32
    %c0_i32_0 = arith.constant 0 : i32
    %c0_i32_1 = arith.constant 0 : i32
    return %arg0, %c0_i32, %c0_i32_0 : i32, i32, i32
  }
  func.func @transform_2(%arg0: i32, %arg1: i32) -> (i32, i32, i32) {
    %c0_i32 = arith.constant 0 : i32
    %c0_i32_0 = arith.constant 0 : i32
    %c0_i32_1 = arith.constant 0 : i32
    return %arg0, %c0_i32, %c0_i32_0 : i32, i32, i32
  }
  func.func @transform_3(%arg0: i32, %arg1: i32) -> (i32, i32) {
    %c0_i32 = arith.constant 0 : i32
    %c0_i32_0 = arith.constant 0 : i32
    %c0_i32_1 = arith.constant 0 : i32
    return %c0_i32, %c0_i32_0 : i32, i32
  }
  func.func @transform_4(%arg0: i32, %arg1: i32) -> (i32, i32) {
    %c0_i32 = arith.constant 0 : i32
    %c0_i32_0 = arith.constant 0 : i32
    %c0_i32_1 = arith.constant 0 : i32
    return %c0_i32, %c0_i32_0 : i32, i32
  }
  func.func @transform_5(%arg0: i32, %arg1: i32) -> (i32, i32, i32) {
    %c0_i32 = arith.constant 0 : i32
    %c0_i32_0 = arith.constant 0 : i32
    return %arg0, %arg1, %c0_i32 : i32, i32, i32
  }
}

</mosaic_0001>

<bundles_post_ra>
// kernel: tpu_custom_call.1
= control target key start
LH: loop header
LB: loop body
LE: loop exit
PB: predicated region body
PF: predicated region fallthrough
CT: control target
= control target key end

     0   :  { %10 = vsyncpa [#allocation3], 0  ;;  %s2605_s0 = inlined_call_operand.hbm [shape: f32[2,256,128], index: 0, kind: input, shape index: {}]   ;;  %s2606_s1 = inlined_call_operand.vmem [shape: f32[2,1,128], index: 1, kind: input, shape index: {}]   ;;  %s2607_s2 = inlined_call_operand.vmem [shape: f32[2,1,128], index: 2, kind: input, shape index: {}]   ;;  %s2608_s3 = inlined_call_operand.hbm [shape: bf16[128,384], index: 3, kind: input, shape index: {}]   ;;  %s2609_s4 = inlined_call_operand.vmem [shape: f32[1,384], index: 4, kind: input, shape index: {}]   ;;  %s2610_s5 = inlined_call_operand.hbm [shape: bf16[2,256,384], index: 5, kind: output, shape index: {}]  }
   0x1   :  { %12 = vsyncpa [#allocation3 + $0x1], 0 }
   0x2   :  { %13 = vsyncpa [#allocation6], 0 }
   0x3   :  { %14 = vsyncpa [#allocation4], 0 }
   0x4   :  { %16 = vsyncpa [#allocation4 + $0x1], 0  ;;  %s2037_s18 = smov 0   ;;  %s2039_s19 = smov 0  }
   0x5   :  { %s2041_s20 = smov 0   ;;  %s2043_s21 = smov 0  }
   0x6   :  { %s2045_s22 = smov 0   ;;  %s2047_s23 = smov 0  }
   0x7 LB: > { %s1480_s24 = sadd.s32 4294967295, %s1995_s23   ;;  %s1481_s25 = sadd.s32 4294967294, %s1995_s23   ;;  %s1995_s23 = sphi %s2047_s23, %s22_s23   ;;  %s1991_s22 = sphi %s2045_s22, %s2634_s22   ;;  %s1987_s21 = sphi %s2043_s21, %s2633_s21   ;;  %s1983_s20 = sphi %s2041_s20, %s2632_s20   ;;  %s1979_s19 = sphi %s2039_s19, %s2631_s19   ;;  %s1975_s18 = sphi %s2037_s18, %s2630_s18  }
   0x8   : > { %p56_p0 = scmp.ne.s32.totalorder %s1979_s19, %s1975_s18  ;;  %p2071_p1 = scmp.eq.s32.totalorder %s1480_s24, 0 }
   0x9   : > { %p2075_p2 = scmp.eq.s32.totalorder %s1480_s24, 1  ;;  %p182_p3 = scmp.eq.s32.totalorder %s1481_s25, 1 }
   0xa   : > { %s2615_s26 = scalar_select %p2071_p1, 1, 0 }
   0xb   : > { %s2616_s27 = scalar_select %p2075_p2, 1, 0 }
   0xc   : > { %p2081_p4 = por %p2071_p1, %p56_p0  ;;  %p1482_p5 = scmp.ge.s32.totalorder %s1995_s23, 1 }
   0xd   : > { %p2086_p6 = por %p182_p3, %p56_p0  ;;  %p189_p7 = scmp.lt.s32.totalorder %s1995_s23, 3 }
   0xe   : > { %s2617_s28 = scalar_select %p2081_p4, 1, 0 }
   0xf   : > { %s2618_s29 = scalar_select %p2086_p6, 1, 0 }
  0x10   : > { %p2091_p8 = pnand %p1482_p5, %p189_p7  ;;  %s1997_s6 = smov [#allocation5]  }
  0x11   : > { %s201_s7 = sshll.u32 %s1997_s6, 4  ;;  %s34_s9 = sadd.s32 1, %s1991_s22  ;;  %s202_s7 = int_to_ptr.vmem [resolvable:$true] %s201_s7 }
  0x12   : > { %s2619_s30 = scalar_select %p2091_p8, 1, 0 }
  0x13   : > { %p1747_p9 = pneg %p2091_p8  ;;  %s1851_s12 = scalar_lea.hbm %s2608_s3, 3072 }
  0x14   : > { %p1852_p12 = scmp.ne.s32.totalorder %s2608_s3, %s1851_s12  ;;  %p1858_p5 = scmp.lt.u32.totalorder %s1851_s12, %s2608_s3 }
  0x15   : > { %p2100_p11 = pnand %p1747_p9, %p2071_p1 }
  0x17   : > { %p1853_p13 = pneg %p2100_p11 }
  0x19   : > { %p1854_p0 = pnand %p1853_p13, %p1852_p12 }
  0x1b   : > { %p1855_p3 = pneg %p1854_p0 }
  0x1d   : > { %p1860_p7 = pnand %p1858_p5, %p1855_p3 }
  0x1f   : > { %1863 = shalt.err (!%p1860_p7)
}
  0x20   : > { %s1864_s17 = scalar_lea.vmem %s202_s7, 3072  ;;  %p1872_p1 = scmp.lt.s32.totalorder %s202_s7, %s202_s7 }
  0x21   : > { %p1865_p9 = scmp.ne.s32.totalorder %s202_s7, %s1864_s17  ;;  %p1873_p4 = scmp.lt.s32.totalorder %s1864_s17, %s1864_s17 }
  0x23   : > { %p1867_p10 = pnand %p1865_p9, %p1853_p13  ;;  %p1874_p8 = por %p1873_p4, %p1872_p1 }
  0x25   : > { %p1868_p6 = pneg %p1867_p10 }
  0x27   : > { %p1875_p2 = pnand %p1874_p8, %p1868_p6 }
  0x29   : > { %1878 = shalt.err (!%p1875_p2)
}
  0x2a   : > { %s1998_s24 = smov 192   ;;  %s1999_s25 = smov 12  }
  0x2b   : > { %1750 = dma.hbm_to_vmem [thread:$0]  (!%p2100_p11), %s2608_s3, 3072, %s202_s7, [#allocation6], %s1998_s24, %s1998_s24, %s1999_s25  }
  0x2c   : > { %p36_p1 = scmp.ge.s32.totalorder %s34_s9, 2  ;;  %s43_s11 = sadd.s32 1, %s1983_s20 }
  0x2d   : > { %p50_p2 = scmp.ne.s32.totalorder %s1983_s20, %s1979_s19  ;;  %p51_p4 = scmp.eq.s32.totalorder %s1995_s23, 0 }
  0x2e   : > { %s2636_s9 = smov (%p36_p1, %s34_s9), 0  ;;  %p2622_p8 = scmp.ne.s32.totalorder %s2616_s27, 0 }
  0x2f   : > { %p2127_p6 = por %p51_p4, %p50_p2  ;;  %s38_s8 = ssub.s32 %s1991_s22, %s2636_s9 }
  0x30   : > { %p2133_p10 = por %p2622_p8, %p50_p2  ;;  %p1760_p12 = scmp.lt.s32.totalorder %s1995_s23, 2 }
  0x31   : > { %p41_p11 = scmp.eq.s32.totalorder %s38_s8, 0  ;;  %s218_s7 = sand.u32 1, %s1983_s20  }
  0x32   : > { %s1485_s14 = sshll.u32 %s218_s7, 8  ;;  %s1584_s16 = sshll.u32 %s1991_s22, 12 }
  0x33   : > { %s2142_s15 = scalar_select %p41_p11, %s1983_s20, %s43_s11  }
  0x34   : > { %s2148_s25 = scalar_lea.hbm %s2605_s0, %s1584_s16  ;;  %s222_s27 = scalar_lea.vmem [#allocation2], %s1485_s14 }
  0x35   : > { %s231_s6 = sshll.u32 %s222_s27, 4  ;;  %p2154_p13 = pnand %p1760_p12, %p2127_p6  ;;  %s2150_s6 = int_to_ptr.vmem [resolvable:$true] %s231_s6 }
  0x36   : > { %s2158_s11 = scalar_lea.sflag [#allocation3], %s218_s7  ;;  %s1879_s8 = scalar_lea.hbm %s2148_s25, 4096 }
  0x37   : > { %p1880_p0 = scmp.ne.s32.totalorder %s2148_s25, %s1879_s8  ;;  %p1881_p3 = pneg %p2154_p13 }
  0x38   : > { %s1884_s12 = scalar_lea.hbm %s2605_s0, 8192  ;;  %p1885_p9 = scmp.lt.u32.totalorder %s2148_s25, %s2605_s0 }
  0x39   : > { %p1882_p5 = pnand %p1881_p3, %p1880_p0  ;;  %p1886_p1 = scmp.lt.u32.totalorder %s1884_s12, %s1879_s8 }
  0x3a   : > { %p1888_p4 = scmp.lt.u32.totalorder %s1879_s8, %s2148_s25 }
  0x3b   : > { %p1883_p7 = pneg %p1882_p5  ;;  %p1887_p2 = por %p1886_p1, %p1885_p9 }
  0x3d   : > { %p1889_p6 = por %p1888_p4, %p1887_p2 }
  0x3f   : > { %p1890_p8 = pnand %p1889_p6, %p1883_p7 }
  0x41   : > { %1893 = shalt.err (!%p1890_p8)
}
  0x42   : > { %s1894_s7 = scalar_lea.vmem %s2150_s6, 4096  ;;  %s2000_s27 = smov [#allocation2]  }
  0x43   : > { %p1895_p12 = scmp.ne.s32.totalorder %s2150_s6, %s1894_s7  ;;  %s1899_s14 = sshll.u32 %s2000_s27, 4  ;;  %s1900_s14 = int_to_ptr.vmem [resolvable:$false] %s1899_s14 }
  0x44   : > { %s1901_s16 = scalar_lea.vmem %s1900_s14, 8192  ;;  %p1902_p5 = scmp.lt.s32.totalorder %s2150_s6, %s1900_s14 }
  0x45   : > { %p1897_p11 = pnand %p1895_p12, %p1881_p3  ;;  %p1903_p9 = scmp.lt.s32.totalorder %s1901_s16, %s1894_s7 }
  0x47   : > { %p1898_p0 = pneg %p1897_p11  ;;  %p1904_p1 = por %p1903_p9, %p1902_p5 }
  0x49   : > { %p1905_p2 = pnand %p1904_p1, %p1898_p0 }
  0x4b   : > { %1908 = shalt.err (!%p1905_p2)
}
  0x4c   : > { %s2001_s8 = smov 128   ;;  %s2002_s12 = smov 8  }
  0x4d   : > { %1754 = dma.hbm_to_vmem [thread:$0]  (!%p2154_p13), %s2148_s25, 4096, %s2150_s6, %s2158_s11, %s2001_s8, %s2001_s8, %s2002_s12  }
  0x4e   : > { %p2625_p3 = scmp.ne.s32.totalorder %s2619_s30, 0 }
  0x4f   : > { %s2189_s17 = sand.u32 (!%p2625_p3), 1, %s1979_s19   ;;  %p2626_p7 = scmp.ne.s32.totalorder (!%p2625_p3), %s2617_s28, 0 }
  0x50   : > { %255 = sbr.rel (%p2625_p3) target bundleno = 447 (0x1bf), region = 40  ;;  %s1489_s24 = sshll.u32 (!%p2625_p3), %s2189_s17, 8 }
  0x51   : > { %s258_s7 = scalar_lea.sflag (!%p2625_p3), [#allocation3], %s2189_s17  ;;  %s2193_s27 = scalar_lea.vmem (!%p2625_p3), [#allocation2], %s1489_s24 }
  0x57   : > { %1962 = dma.done.wait (%p2626_p7), %s258_s7, 4096  }
  0x58   : > { %1964 = vsyncadd (%p2626_p7), %s258_s7, 4294963200  ;;  %p2627_p13 = scmp.ne.s32.totalorder %s2615_s26, 0 }
  0x5a   : > { %1966 = dma.done.wait (%p2627_p13), [#allocation6], 3072  }
  0x5b   : > { %1968 = vsyncadd (%p2627_p13), [#allocation6], 4294964224  ;;  %v2003_v0 = vmov 0   ;;  %v1819_v1 = vld [vmem:[#allocation5 + $0x4] ss:$12 sps:$4 sm:$0xff]   ;;  %p299_p4 = scmp.lt.s32.totalorder %s1987_s21, 1 }
  0x5c   : > { %642 = vmatprep.mubr.bf16.mxu0 %v2003_v0  ;;  %762 = vmatprep.mubr.bf16.mxu1 %v2003_v0  ;;  %v1821_v2 = vld [vmem:[#allocation5] ss:$12 sps:$4 sm:$0xff]   ;;  %v1822_v3 = vld [vmem:[#allocation5 + $0x1c] ss:$12 sps:$4 sm:$0xff]   ;;  %v1824_v4 = vld [vmem:[#allocation5 + $0x18] ss:$12 sps:$4 sm:$0xff]  }
  0x5d   : > { %610 = vmatprep.subr.bf16.mxu0 %v1819_v1  ;;  %1721 = vmatprep.subr.bf16.mxu1 %v1819_v1  ;;  %v1825_v5 = vld [vmem:[#allocation5 + $0x34] ss:$12 sps:$4 sm:$0xff]   ;;  %v1827_v6 = vld [vmem:[#allocation5 + $0x30] ss:$12 sps:$4 sm:$0xff]   ;;  %v1828_v7 = vld [vmem:[#allocation5 + $0x4c] ss:$12 sps:$4 sm:$0xff]  }
  0x5e   : > { %611 = vmatpush1.bf16.msra.mxu0 %v1821_v2  ;;  %1729 = vmatpush1.bf16.msra.mxu1 %v1821_v2  ;;  %v1830_v8 = vld [vmem:[#allocation5 + $0x48] ss:$12 sps:$4 sm:$0xff]   ;;  %s2207_s26 = scalar_select %p299_p4, %s1987_s21, 1  ;;  %v1831_v9 = vld [vmem:[#allocation5 + $0x64] ss:$12 sps:$4 sm:$0xff]   ;;  %v310_v31 = vld [vmem:[%s2193_s27 + $0x18] sm:$0xff] }
  0x5f   : > { %612 = vmatprep.subr.bf16.mxu0 %v1822_v3  ;;  %1722 = vmatprep.subr.bf16.mxu1 %v1822_v3  ;;  %v1833_v10 = vld [vmem:[#allocation5 + $0x60] ss:$12 sps:$4 sm:$0xff]   ;;  %v1834_v11 = vld [vmem:[#allocation5 + $0x7c] ss:$12 sps:$4 sm:$0xff]   ;;  %v1836_v12 = vld [vmem:[#allocation5 + $0x78] ss:$12 sps:$4 sm:$0xff]  }
  0x60   : > { %s301_s25 = scalar_lea.vmem %s2606_s1, %s2207_s26  ;;  %v307_v13 = vld [vmem:[%s2193_s27] sm:$0xff]  ;;  %v308_v14 = vld [vmem:[%s2193_s27 + $0x8] sm:$0xff]  ;;  %s304_s11 = scalar_lea.vmem %s2607_s2, %s2207_s26  ;;  %v1839_v19 = vld [vmem:[#allocation5 + $0x90] ss:$12 sps:$4 sm:$0xff]  }
  0x61   : > { %v2215_v15 = vld [vmem:[%s301_s25] ss:$0 sm:$0xff]  ;;  %v332_v17 = vld [vmem:[%s2193_s27 + $0xc8] sm:$0xff]  ;;  %v309_v26 = vld [vmem:[%s2193_s27 + $0x10] sm:$0xff]  ;;  %s1737_s8 = smul.u32 384, %s2189_s17  ;;  %s1349_s28 = scalar_lea.sflag [#allocation4], %s2189_s17 }
  0x62   : > { %613 = vmatpush1.bf16.msra.mxu0 %v1824_v4  ;;  %1730 = vmatpush1.bf16.msra.mxu1 %v1824_v4  ;;  %v331_v16 = vld [vmem:[%s2193_s27 + $0xc0] sm:$0xff]  ;;  %v346_v20 = vmul.f32 %v2215_v15, %v307_v13  ;;  %v347_v21 = vmul.f32 %v2215_v15, %v308_v14  ;;  %v371_v23 = vmul.f32 %v2215_v15, %v332_v17  ;;  %v1840_v25 = vld [vmem:[#allocation5 + $0xac] ss:$12 sps:$4 sm:$0xff]   ;;  %v333_v32 = vld [vmem:[%s2193_s27 + $0xd0] sm:$0xff]  ;;  %s1738_s24 = smul.u32 6144, %s1987_s21  ;;  %s2004_s25 = smov [#allocation7]  }
  0x63   : > { %614 = vmatprep.subr.bf16.mxu0 %v1825_v5  ;;  %1723 = vmatprep.subr.bf16.mxu1 %v1825_v5  ;;  %v1837_v18 = vld [vmem:[#allocation5 + $0x94] ss:$12 sps:$4 sm:$0xff]   ;;  %v370_v22 = vmul.f32 %v2215_v15, %v331_v16  ;;  %v334_v34 = vld [vmem:[%s2193_s27 + $0xd8] sm:$0xff]  ;;  %v348_v36 = vmul.f32 %v2215_v15, %v309_v26  ;;  %v349_v37 = vmul.f32 %v2215_v15, %v310_v31  ;;  %v328_v45 = vld [vmem:[%s2193_s27 + $0xa8] sm:$0xff]  ;;  %s2391_s12 = scalar_lea.vmem [#allocation7], %s1737_s8  ;;  %s1913_s6 = sshll.u32 %s2004_s25, 4  ;;  %s1914_s6 = int_to_ptr.vmem [resolvable:$false] %s1913_s6 }
  0x64   : > { %v2227_v24 = vld [vmem:[%s304_s11] ss:$0 sm:$0xff]  ;;  %v1842_v33 = vld [vmem:[#allocation5 + $0xa8] ss:$12 sps:$4 sm:$0xff]   ;;  %v372_v38 = vmul.f32 %v2215_v15, %v333_v32  ;;  %v326_v40 = vld [vmem:[%s2193_s27 + $0x98] sm:$0xff]  ;;  %v373_v43 = vmul.f32 %v2215_v15, %v334_v34  ;;  %v367_v55 = vmul.f32 %v2215_v15, %v328_v45  ;;  %s1365_s7 = sshll.u32 %s2391_s12, 4  ;;  %s2549_s26 = scalar_lea.hbm %s2610_s5, %s1738_s24  ;;  %s2551_s7 = int_to_ptr.vmem [resolvable:$true] %s1365_s7 }
  0x65   : > { %v385_v27 = vadd.f32 %v2227_v24, %v346_v20  ;;  %v386_v28 = vadd.f32 %v2227_v24, %v347_v21  ;;  %v409_v29 = vadd.f32 %v2227_v24, %v370_v22  ;;  %v410_v30 = vadd.f32 %v2227_v24, %v371_v23  ;;  %v1843_v35 = vld [vmem:[#allocation5 + $0x8] ss:$12 sps:$4 sm:$0xff]   ;;  %v327_v44 = vld [vmem:[%s2193_s27 + $0xa0] sm:$0xff]  ;;  %v330_v56 = vld [vmem:[%s2193_s27 + $0xb8] sm:$0xff]  ;;  %s1909_s30 = scalar_lea.vmem %s2551_s7, 6144  ;;  %s1915_s10 = scalar_lea.vmem %s1914_s6, 12288 }
  0x66   : > { %615 = vmatpush1.bf16.msra.mxu0 %v1827_v6  ;;  %1731 = vmatpush1.bf16.msra.mxu1 %v1827_v6  ;;  %v325_v39 = vld [vmem:[%s2193_s27 + $0x90] sm:$0xff]  ;;  %v1844_v46 = vld [vmem:[#allocation5 + $0x20] ss:$12 sps:$4 sm:$0xff]   ;;  %v387_v47 = vadd.f32 %v2227_v24, %v348_v36  ;;  %v365_v49 = vmul.f32 %v2215_v15, %v326_v40  ;;  %v388_v51 = vadd.f32 %v2227_v24, %v349_v37  ;;  %v1845_v3 = vld [vmem:[#allocation5 + $0x38] ss:$12 sps:$4 sm:$0xff]   ;;  %p1910_p6 = scmp.ne.s32.totalorder %s2551_s7, %s1909_s30  ;;  %p1916_p11 = scmp.lt.s32.totalorder %s2551_s7, %s1914_s6 }
  0x67   : > { %616 = vmatprep.subr.bf16.mxu0 %v1828_v7  ;;  %1724 = vmatprep.subr.bf16.mxu1 %v1828_v7  ;;  %v2242_v41 = vpack.c.bf16 %v386_v28, %v385_v27  ;;  %v2244_v42 = vpack.c.bf16 %v410_v30, %v409_v29  ;;  %v364_v48 = vmul.f32 %v2215_v15, %v325_v39  ;;  %v329_v50 = vld [vmem:[%s2193_s27 + $0xb0] sm:$0xff]  ;;  %v311_v53 = vld [vmem:[%s2193_s27 + $0x20] sm:$0xff]  ;;  %v312_v58 = vld [vmem:[%s2193_s27 + $0x28] sm:$0xff]  ;;  %p1917_p0 = scmp.lt.s32.totalorder %s1915_s10, %s1909_s30 }
  0x68   : > { %v411_v52 = vadd.f32 %v2227_v24, %v372_v38  ;;  %v366_v54 = vmul.f32 %v2215_v15, %v327_v44  ;;  %v412_v57 = vadd.f32 %v2227_v24, %v373_v43  ;;  %v404_v60 = vadd.f32 %v2227_v24, %v365_v49  ;;  %v335_v61 = vld [vmem:[%s2193_s27 + $0xe0] sm:$0xff]  ;;  %v336_v62 = vld [vmem:[%s2193_s27 + $0xe8] sm:$0xff]  ;;  %v1846_v16 = vld [vmem:[#allocation5 + $0x50] ss:$12 sps:$4 sm:$0xff]   ;;  %p1911_p8 = pnand %p1910_p6, %p2133_p10 }
  0x69   : > { %v403_v59 = vadd.f32 %v2227_v24, %v364_v48  ;;  %v406_v1 = vadd.f32 %v2227_v24, %v367_v55  ;;  %v368_v2 = vmul.f32 %v2215_v15, %v329_v50  ;;  %v350_v4 = vmul.f32 %v2215_v15, %v311_v53  ;;  %v313_v22 = vld [vmem:[%s2193_s27 + $0x30] sm:$0xff]  ;;  %v314_v23 = vld [vmem:[%s2193_s27 + $0x38] sm:$0xff]  ;;  %v1848_v34 = vld [vmem:[#allocation5 + $0x80] ss:$12 sps:$4 sm:$0xff]   ;;  %p1918_p5 = por %p1917_p0, %p1916_p11 }
  0x6a   : > { %617 = vmatpush1.bf16.msra.mxu0 %v1830_v8  ;;  %1732 = vmatpush1.bf16.msra.mxu1 %v1830_v8  ;;  %v405_v63 = vadd.f32 %v2227_v24, %v366_v54  ;;  %v369_v6 = vmul.f32 %v2215_v15, %v330_v56  ;;  %v2276_v7 = vpack.c.bf16 %v388_v51, %v387_v47  ;;  %v338_v26 = vld [vmem:[%s2193_s27 + $0xf8] sm:$0xff]  ;;  %v1847_v27 = vld [vmem:[#allocation5 + $0x68] ss:$12 sps:$4 sm:$0xff]   ;;  %v315_v39 = vld [vmem:[%s2193_s27 + $0x40] sm:$0xff]  ;;  %p1912_p12 = pneg %p1911_p8 }
  0x6b   : > { %618 = vmatprep.subr.bf16.mxu0 %v1831_v9  ;;  %1725 = vmatprep.subr.bf16.mxu1 %v1831_v9  ;;  %v2273_v5 = vpack.c.bf16 %v404_v60, %v403_v59  ;;  %v351_v8 = vmul.f32 %v2215_v15, %v312_v58  ;;  %v375_v13 = vmul.f32 %v2215_v15, %v336_v62  ;;  %v316_v40 = vld [vmem:[%s2193_s27 + $0x48] sm:$0xff]  ;;  %v1849_v43 = vld [vmem:[#allocation5 + $0x98] ss:$12 sps:$4 sm:$0xff]   ;;  %v1850_v48 = vld [vmem:[#allocation5 + $0xb0] ss:$12 sps:$4 sm:$0xff]  }
  0x6c   : > { %v2279_v9 = vpack.c.bf16 %v406_v1, %v405_v63  ;;  %v408_v14 = vadd.f32 %v2227_v24, %v369_v6  ;;  %v352_v28 = vmul.f32 %v2215_v15, %v313_v22  ;;  %v353_v29 = vmul.f32 %v2215_v15, %v314_v23  ;;  %v317_v51 = vld [vmem:[%s2193_s27 + $0x50] sm:$0xff]  ;;  %v320_v58 = vld [vmem:[%s2193_s27 + $0x68] sm:$0xff]  ;;  %p1919_p9 = pnand %p1918_p5, %p1912_p12 }
  0x6d   : > { %v414_v21 = vadd.f32 %v2227_v24, %v375_v13  ;;  %v355_v47 = vmul.f32 %v2215_v15, %v316_v40  ;;  %v356_v54 = vmul.f32 %v2215_v15, %v317_v51  ;;  %v321_v1 = vld [vmem:[%s2193_s27 + $0x70] sm:$0xff] }
  0x6e   : > { %619 = vmatpush1.bf16.msra.mxu0 %v1833_v10  ;;  %1733 = vmatpush1.bf16.msra.mxu1 %v1833_v10  ;;  %v407_v10 = vadd.f32 %v2227_v24, %v368_v2  ;;  %v392_v36 = vadd.f32 %v2227_v24, %v353_v29  ;;  %v322_v2 = vld [vmem:[%s2193_s27 + $0x78] sm:$0xff] }
  0x6f   : > { %620 = vmatprep.subr.bf16.mxu0 %v1834_v11  ;;  %1726 = vmatprep.subr.bf16.mxu1 %v1834_v11  ;;  %v2282_v11 = vpack.c.bf16 %v412_v57, %v411_v52  ;;  %v394_v50 = vadd.f32 %v2227_v24, %v355_v47  ;;  %v318_v52 = vld [vmem:[%s2193_s27 + $0x58] sm:$0xff]  ;;  %v395_v56 = vadd.f32 %v2227_v24, %v356_v54 }
  0x70   : > { %v2287_v17 = vpack.c.bf16 %v408_v14, %v407_v10  ;;  %v357_v55 = vmul.f32 %v2215_v15, %v318_v52 }
  0x72   : > { %621 = vmatpush1.bf16.msra.mxu0 %v1836_v12  ;;  %1734 = vmatpush1.bf16.msra.mxu1 %v1836_v12  ;;  %v374_v12 = vmul.f32 %v2215_v15, %v335_v61  ;;  %v396_v57 = vadd.f32 %v2227_v24, %v357_v55  ;;  %v359_v61 = vmul.f32 %v2215_v15, %v320_v58 }
  0x73   : > { %622 = vmatprep.subr.bf16.mxu0 %v1837_v18  ;;  %1727 = vmatprep.subr.bf16.mxu1 %v1837_v18  ;;  %v389_v18 = vadd.f32 %v2227_v24, %v350_v4  ;;  %v324_v4 = vld [vmem:[%s2193_s27 + $0x88] sm:$0xff] }
  0x74   : > { %v413_v20 = vadd.f32 %v2227_v24, %v374_v12  ;;  %v422_v59 = vpack.c.bf16 %v396_v57, %v395_v56  ;;  %v398_v63 = vadd.f32 %v2227_v24, %v359_v61  ;;  %v363_v12 = vmul.f32 %v2215_v15, %v324_v4 }
  0x76   : > { %623 = vmatpush1.bf16.msra.mxu0 %v1839_v19  ;;  %1735 = vmatpush1.bf16.msra.mxu1 %v1839_v19  ;;  %v390_v19 = vadd.f32 %v2227_v24, %v351_v8  ;;  %v2303_v31 = vpack.c.bf16 %v414_v21, %v413_v20  ;;  %v361_v8 = vmul.f32 %v2215_v15, %v322_v2 }
  0x77   : > { %624 = vmatprep.subr.bf16.mxu0 %v1840_v25  ;;  %1728 = vmatprep.subr.bf16.mxu1 %v1840_v25  ;;  %v337_v25 = vld [vmem:[%s2193_s27 + $0xf0] sm:$0xff] }
  0x78   : > { %v419_v30 = vpack.c.bf16 %v390_v19, %v389_v18  ;;  %v376_v32 = vmul.f32 %v2215_v15, %v337_v25  ;;  %v400_v14 = vadd.f32 %v2227_v24, %v361_v8  ;;  %v402_v18 = vadd.f32 %v2227_v24, %v363_v12 }
  0x7a   : > { %625 = vmatpush1.bf16.msra.mxu0 %v1842_v33  ;;  %1736 = vmatpush1.bf16.msra.mxu1 %v1842_v33  ;;  %v377_v33 = vmul.f32 %v2215_v15, %v338_v26  ;;  %v415_v37 = vadd.f32 %v2227_v24, %v376_v32 }
  0x7b   : > { %1673 = vmatprep.subr.bf16.mxu1 %v1843_v35 }
  0x7c   : > { %v416_v38 = vadd.f32 %v2227_v24, %v377_v33 }
  0x7d   : > { %643 = vmatmul.mubr.bf16.vlgmr.msra.gmra.mrb[0].mxu0 %v2242_v41  ;;  %763 = vmatmul.mubr.bf16.vlgmr.msra.gmra.mrb[0].mxu1 %v2244_v42 }
  0x7e   : > { %1674 = vmatpush3.bf16.msra.mxu1 %v1843_v35  ;;  %652 = vmatprep.mubr.bf16.mxu0 %v2003_v0  ;;  %v391_v35 = vadd.f32 %v2227_v24, %v352_v28  ;;  %v2316_v45 = vpack.c.bf16 %v416_v38, %v415_v37 }
  0x7f   : > { %1675 = vmatprep.subr.bf16.mxu1 %v1844_v46  ;;  %772 = vmatprep.mubr.bf16.mxu1 %v2003_v0 }
  0x80   : > { %v420_v44 = vpack.c.bf16 %v392_v36, %v391_v35 }
  0x82   : > { %1676 = vmatpush3.bf16.msra.mxu1 %v1844_v46  ;;  %v354_v46 = vmul.f32 %v2215_v15, %v315_v39 }
  0x83   : > { %1677 = vmatprep.subr.bf16.mxu1 %v1845_v3 }
  0x84   : > { %v393_v49 = vadd.f32 %v2227_v24, %v354_v46 }
  0x85   : > { %653 = vmatmul.mubr.bf16.gmra.mrb[4].mxu0 %v2276_v7  ;;  %773 = vmatmul.mubr.bf16.gmra.mrb[4].mxu1 %v2282_v11 }
  0x86   : > { %1678 = vmatpush3.bf16.msra.mxu1 %v1845_v3  ;;  %662 = vmatprep.mubr.bf16.mxu0 %v2003_v0  ;;  %v421_v53 = vpack.c.bf16 %v394_v50, %v393_v49  ;;  %v323_v3 = vld [vmem:[%s2193_s27 + $0x80] sm:$0xff] }
  0x87   : > { %1679 = vmatprep.subr.bf16.mxu1 %v1846_v16  ;;  %782 = vmatprep.mubr.bf16.mxu1 %v2003_v0  ;;  %v362_v10 = vmul.f32 %v2215_v15, %v323_v3 }
  0x8a   : > { %1680 = vmatpush3.bf16.msra.mxu1 %v1846_v16  ;;  %v401_v16 = vadd.f32 %v2227_v24, %v362_v10 }
  0x8b   : > { %1681 = vmatprep.subr.bf16.mxu1 %v1847_v27 }
  0x8c   : > { %v425_v20 = vpack.c.bf16 %v402_v18, %v401_v16 }
  0x8d   : > { %663 = vmatmul.mubr.bf16.gmra.mrb[8].mxu0 %v419_v30  ;;  %783 = vmatmul.mubr.bf16.gmra.mrb[8].mxu1 %v2303_v31 }
  0x8e   : > { %1682 = vmatpush3.bf16.msra.mxu1 %v1847_v27  ;;  %672 = vmatprep.mubr.bf16.mxu0 %v2003_v0 }
  0x8f   : > { %1683 = vmatprep.subr.bf16.mxu1 %v1848_v34  ;;  %792 = vmatprep.mubr.bf16.mxu1 %v2003_v0 }
  0x92   : > { %1684 = vmatpush3.bf16.msra.mxu1 %v1848_v34 }
  0x93   : > { %1685 = vmatprep.subr.bf16.mxu1 %v1849_v43 }
  0x95   : > { %673 = vmatmul.mubr.bf16.gmra.mrb[12].mxu0 %v420_v44  ;;  %793 = vmatmul.mubr.bf16.gmra.mrb[12].mxu1 %v2316_v45 }
  0x96   : > { %1686 = vmatpush3.bf16.msra.mxu1 %v1849_v43  ;;  %682 = vmatprep.mubr.bf16.mxu0 %v2003_v0 }
  0x97   : > { %1687 = vmatprep.subr.bf16.mxu1 %v1850_v48  ;;  %1689 = vmatprep.mubr.bf16.mxu1 %v2242_v41  ;;  %v319_v41 = vld [vmem:[%s2193_s27 + $0x60] sm:$0xff] }
  0x98   : > { %v358_v60 = vmul.f32 %v2215_v15, %v319_v41 }
  0x9a   : > { %1688 = vmatpush3.bf16.msra.mxu1 %v1850_v48  ;;  %v397_v62 = vadd.f32 %v2227_v24, %v358_v60 }
  0x9c   : > { %v423_v6 = vpack.c.bf16 %v398_v63, %v397_v62 }
  0x9d   : > { %683 = vmatmul.mubr.bf16.gmra.mrb[16].mxu0 %v421_v53  ;;  %1690 = vmatmul.mubr.bf16.vlgmr.msra.gmra.mrb[16].mxu1 %v2276_v7  ;;  %v360_v7 = vmul.f32 %v2215_v15, %v321_v1  ;;  %v467_v15 = vlaneseq }
  0x9e   : > { %692 = vmatprep.mubr.bf16.mxu0 %v2003_v0  ;;  %1693 = vmatprep.mubr.bf16.mxu1 %v419_v30 }
  0x9f   : > { %v399_v13 = vadd.f32 %v2227_v24, %v360_v7  ;;  %v2367_v24 = vshrl.u32 %v467_v15, 7 }
  0xa1   : > { %v424_v19 = vpack.c.bf16 %v400_v14, %v399_v13 }
  0xa5   : > { %693 = vmatmul.mubr.bf16.gmra.mrb[20].mxu0 %v422_v59  ;;  %1694 = vmatmul.mubr.bf16.gmra.mrb[20].mxu1 %v420_v44 }
  0xa6   : > { %702 = vmatprep.mubr.bf16.mxu0 %v2003_v0  ;;  %1697 = vmatprep.mubr.bf16.mxu1 %v421_v53 }
  0xad   : > { %703 = vmatmul.mubr.bf16.gmra.mrb[24].mxu0 %v423_v6  ;;  %1698 = vmatmul.mubr.bf16.gmra.mrb[24].mxu1 %v422_v59 }
  0xae   : > { %712 = vmatprep.mubr.bf16.mxu0 %v2003_v0  ;;  %1701 = vmatprep.mubr.bf16.mxu1 %v423_v6 }
  0xb5   : > { %713 = vmatmul.mubr.bf16.gmra.mrb[28].mxu0 %v424_v19  ;;  %1702 = vmatmul.mubr.bf16.gmra.mrb[28].mxu1 %v424_v19 }
  0xb6   : > { %722 = vmatprep.mubr.bf16.mxu0 %v2003_v0  ;;  %1705 = vmatprep.mubr.bf16.mxu1 %v425_v20 }
  0xbd   : > { %723 = vmatmul.mubr.bf16.gmra.mrb[32].mxu0 %v425_v20  ;;  %1706 = vmatmul.mubr.bf16.gmra.mrb[32].mxu1 %v2273_v5 }
  0xbe   : > { %732 = vmatprep.mubr.bf16.mxu0 %v2003_v0  ;;  %1709 = vmatprep.mubr.bf16.mxu1 %v2279_v9 }
  0xc5   : > { %733 = vmatmul.mubr.bf16.gmra.mrb[36].mxu0 %v2273_v5  ;;  %1710 = vmatmul.mubr.bf16.gmra.mrb[36].mxu1 %v2287_v17  ;;  %v469_v5 = vsub.s32 0, %v2367_v24 }
  0xc6   : > { %742 = vmatprep.mubr.bf16.mxu0 %v2003_v0  ;;  %1713 = vmatprep.mubr.bf16.mxu1 %v2244_v42  ;;  %v2373_v42 = vld [vmem:[%s2609_s4] sm:$0x7] }
  0xcd   : > { %743 = vmatmul.mubr.bf16.gmra.mrb[40].mxu0 %v2279_v9  ;;  %1714 = vmatmul.mubr.bf16.gmra.mrb[40].mxu1 %v2282_v11  ;;  %v473_v9 = vsub.s32 1, %v2367_v24 }
  0xce   : > { %752 = vmatprep.mubr.bf16.mxu0 %v2003_v0  ;;  %1717 = vmatprep.mubr.bf16.mxu1 %v2303_v31  ;;  %v2377_v0 = vrot.slane %v2373_v42, %v469_v5 }
  0xcf   : > { %v2380_v11 = vrot.slane %v2373_v42, %v473_v9 }
  0xd5   : > { %753 = vmatmul.mubr.bf16.gmra.mrb[44].mxu0 %v2287_v17  ;;  %1718 = vmatmul.mubr.bf16.gmra.mrb[44].mxu1 %v2316_v45 }
 0x150   : > { %v644_v17 = vpop.f32.mrb[0].mxu0  ;;  %v764_v21 = vpop.f32.mrb[0].mxu1 }
 0x151   : > { %v645_v22 = vadd.f32 %v644_v17, %v2377_v0  ;;  %v765_v23 = vadd.f32 %v764_v21, %v2377_v0  ;;  %v646_v25 = vpop.f32.mrb[1].mxu0  ;;  %v766_v26 = vpop.f32.mrb[1].mxu1 }
 0x152   : > { %v647_v27 = vadd.f32 %v646_v25, %v2380_v11  ;;  %v767_v28 = vadd.f32 %v766_v26, %v2380_v11  ;;  %v648_v29 = vpop.f32.mrb[2].mxu0  ;;  %v768_v30 = vpop.f32.mrb[2].mxu1 }
 0x153   : > { %v649_v31 = vadd.f32 %v648_v29, %v2377_v0  ;;  %v769_v32 = vadd.f32 %v768_v30, %v2377_v0  ;;  %v650_v33 = vpop.f32.mrb[3].mxu0  ;;  %v770_v34 = vpop.f32.mrb[3].mxu1 }
 0x154   : > { %v1585_v35 = vpack.c.bf16 %v647_v27, %v645_v22  ;;  %v1633_v36 = vpack.c.bf16 %v767_v28, %v765_v23  ;;  %v651_v37 = vadd.f32 %v650_v33, %v2380_v11  ;;  %v771_v38 = vadd.f32 %v770_v34, %v2380_v11 }
 0x155   : > { %v477_v27 = vsub.s32 2, %v2367_v24 }
 0x156   : > { %1284 = vst [vmem:[%s2391_s12] sm:$0xff] %v1585_v35  ;;  %1332 = vst [vmem:[%s2391_s12 + $0x120] sm:$0xff] %v1633_v36  ;;  %v1587_v39 = vpack.c.bf16 %v651_v37, %v649_v31  ;;  %v1635_v40 = vpack.c.bf16 %v771_v38, %v769_v32 }
 0x158   : > { %1286 = vst [vmem:[%s2391_s12 + $0xc] sm:$0xff] %v1587_v39  ;;  %1334 = vst [vmem:[%s2391_s12 + $0x12c] sm:$0xff] %v1635_v40  ;;  %v654_v43 = vpop.f32.mrb[4].mxu0  ;;  %v774_v44 = vpop.f32.mrb[4].mxu1  ;;  %v2431_v39 = vrot.slane %v2373_v42, %v477_v27 }
 0x159   : > { %v655_v45 = vadd.f32 %v654_v43, %v2377_v0  ;;  %v775_v46 = vadd.f32 %v774_v44, %v2377_v0  ;;  %v656_v47 = vpop.f32.mrb[5].mxu0  ;;  %v776_v48 = vpop.f32.mrb[5].mxu1 }
 0x15a   : > { %v657_v49 = vadd.f32 %v656_v47, %v2380_v11  ;;  %v777_v50 = vadd.f32 %v776_v48, %v2380_v11  ;;  %v658_v51 = vpop.f32.mrb[6].mxu0  ;;  %v778_v52 = vpop.f32.mrb[6].mxu1 }
 0x15b   : > { %v659_v53 = vadd.f32 %v658_v51, %v2377_v0  ;;  %v779_v54 = vadd.f32 %v778_v52, %v2377_v0  ;;  %v660_v55 = vpop.f32.mrb[7].mxu0  ;;  %v780_v56 = vpop.f32.mrb[7].mxu1 }
 0x15c   : > { %v1589_v57 = vpack.c.bf16 %v657_v49, %v655_v45  ;;  %v1637_v41 = vpack.c.bf16 %v777_v50, %v775_v46  ;;  %v661_v58 = vadd.f32 %v660_v55, %v2380_v11  ;;  %v781_v59 = vadd.f32 %v780_v56, %v2380_v11 }
 0x15e   : > { %1288 = vst [vmem:[%s2391_s12 + $0x18] sm:$0xff] %v1589_v57  ;;  %1336 = vst [vmem:[%s2391_s12 + $0x138] sm:$0xff] %v1637_v41  ;;  %v1591_v60 = vpack.c.bf16 %v661_v58, %v659_v53  ;;  %v1639_v61 = vpack.c.bf16 %v781_v59, %v779_v54 }
 0x160   : > { %1290 = vst [vmem:[%s2391_s12 + $0x24] sm:$0xff] %v1591_v60  ;;  %1338 = vst [vmem:[%s2391_s12 + $0x144] sm:$0xff] %v1639_v61  ;;  %v664_v62 = vpop.f32.mrb[8].mxu0  ;;  %v784_v63 = vpop.f32.mrb[8].mxu1 }
 0x161   : > { %v665_v1 = vadd.f32 %v664_v62, %v2377_v0  ;;  %v785_v2 = vadd.f32 %v784_v63, %v2377_v0  ;;  %v666_v3 = vpop.f32.mrb[9].mxu0  ;;  %v786_v4 = vpop.f32.mrb[9].mxu1 }
 0x162   : > { %v667_v6 = vadd.f32 %v666_v3, %v2380_v11  ;;  %v787_v7 = vadd.f32 %v786_v4, %v2380_v11  ;;  %v668_v8 = vpop.f32.mrb[10].mxu0  ;;  %v788_v10 = vpop.f32.mrb[10].mxu1 }
 0x163   : > { %v669_v12 = vadd.f32 %v668_v8, %v2377_v0  ;;  %v789_v13 = vadd.f32 %v788_v10, %v2377_v0  ;;  %v670_v14 = vpop.f32.mrb[11].mxu0  ;;  %v790_v16 = vpop.f32.mrb[11].mxu1 }
 0x164   : > { %v1593_v18 = vpack.c.bf16 %v667_v6, %v665_v1  ;;  %v1641_v19 = vpack.c.bf16 %v787_v7, %v785_v2  ;;  %v671_v20 = vadd.f32 %v670_v14, %v2380_v11  ;;  %v791_v15 = vadd.f32 %v790_v16, %v2380_v11 }
 0x166   : > { %1292 = vst [vmem:[%s2391_s12 + $0x30] sm:$0xff] %v1593_v18  ;;  %1340 = vst [vmem:[%s2391_s12 + $0x150] sm:$0xff] %v1641_v19  ;;  %v1595_v5 = vpack.c.bf16 %v671_v20, %v669_v12  ;;  %v1643_v9 = vpack.c.bf16 %v791_v15, %v789_v13 }
 0x168   : > { %1294 = vst [vmem:[%s2391_s12 + $0x3c] sm:$0xff] %v1595_v5  ;;  %1342 = vst [vmem:[%s2391_s12 + $0x15c] sm:$0xff] %v1643_v9  ;;  %v674_v17 = vpop.f32.mrb[12].mxu0  ;;  %v794_v21 = vpop.f32.mrb[12].mxu1 }
 0x169   : > { %v675_v22 = vadd.f32 %v674_v17, %v2377_v0  ;;  %v795_v23 = vadd.f32 %v794_v21, %v2377_v0  ;;  %v676_v25 = vpop.f32.mrb[13].mxu0  ;;  %v796_v26 = vpop.f32.mrb[13].mxu1 }
 0x16a   : > { %v677_v28 = vadd.f32 %v676_v25, %v2380_v11  ;;  %v797_v29 = vadd.f32 %v796_v26, %v2380_v11  ;;  %v678_v30 = vpop.f32.mrb[14].mxu0  ;;  %v798_v31 = vpop.f32.mrb[14].mxu1 }
 0x16b   : > { %v679_v32 = vadd.f32 %v678_v30, %v2377_v0  ;;  %v799_v33 = vadd.f32 %v798_v31, %v2377_v0  ;;  %v680_v34 = vpop.f32.mrb[15].mxu0  ;;  %v800_v35 = vpop.f32.mrb[15].mxu1 }
 0x16c   : > { %v1597_v36 = vpack.c.bf16 %v677_v28, %v675_v22  ;;  %v1645_v37 = vpack.c.bf16 %v797_v29, %v795_v23  ;;  %v681_v38 = vadd.f32 %v680_v34, %v2380_v11  ;;  %v801_v24 = vadd.f32 %v800_v35, %v2380_v11 }
 0x16e   : > { %1296 = vst [vmem:[%s2391_s12 + $0x48] sm:$0xff] %v1597_v36  ;;  %1344 = vst [vmem:[%s2391_s12 + $0x168] sm:$0xff] %v1645_v37  ;;  %v1599_v40 = vpack.c.bf16 %v681_v38, %v679_v32  ;;  %v1647_v43 = vpack.c.bf16 %v801_v24, %v799_v33 }
 0x170   : > { %1298 = vst [vmem:[%s2391_s12 + $0x54] sm:$0xff] %v1599_v40  ;;  %1346 = vst [vmem:[%s2391_s12 + $0x174] sm:$0xff] %v1647_v43  ;;  %v684_v44 = vpop.f32.mrb[16].mxu0  ;;  %v1691_v45 = vpop.f32.mrb[16].mxu1 }
 0x171   : > { %v685_v46 = vadd.f32 %v684_v44, %v2377_v0  ;;  %v846_v47 = vadd.f32 %v1691_v45, %v2431_v39  ;;  %v686_v48 = vpop.f32.mrb[17].mxu0  ;;  %v837_v49 = vpop.f32.mrb[17].mxu1 }
 0x172   : > { %v687_v50 = vadd.f32 %v686_v48, %v2380_v11  ;;  %v838_v42 = vadd.f32 %v837_v49, %v2431_v39  ;;  %v688_v51 = vpop.f32.mrb[18].mxu0  ;;  %v1692_v52 = vpop.f32.mrb[18].mxu1 }
 0x173   : > { %v1590_v53 = vpack.c.bf16 %v846_v47, %v846_v47  ;;  %v689_v54 = vadd.f32 %v688_v51, %v2377_v0  ;;  %v849_v55 = vadd.f32 %v1692_v52, %v2431_v39  ;;  %v690_v56 = vpop.f32.mrb[19].mxu0  ;;  %v840_v57 = vpop.f32.mrb[19].mxu1 }
 0x174   : > { %v1601_v41 = vpack.c.bf16 %v687_v50, %v685_v46  ;;  %v1586_v58 = vpack.c.bf16 %v838_v42, %v838_v42  ;;  %v691_v59 = vadd.f32 %v690_v56, %v2380_v11  ;;  %v841_v60 = vadd.f32 %v840_v57, %v2431_v39 }
 0x175   : > { %1289 = vst [vmem:[%s2391_s12 + $0x20] sm:$0xf] %v1590_v53  ;;  %v1592_v61 = vpack.c.bf16 %v849_v55, %v849_v55 }
 0x176   : > { %1300 = vst [vmem:[%s2391_s12 + $0x60] sm:$0xff] %v1601_v41  ;;  %1285 = vst [vmem:[%s2391_s12 + $0x8] sm:$0xf] %v1586_v58  ;;  %v1603_v62 = vpack.c.bf16 %v691_v59, %v689_v54  ;;  %v1588_v63 = vpack.c.bf16 %v841_v60, %v841_v60 }
 0x177   : > { %1291 = vst [vmem:[%s2391_s12 + $0x2c] sm:$0xf] %v1592_v61 }
 0x178   : > { %1302 = vst [vmem:[%s2391_s12 + $0x6c] sm:$0xff] %v1603_v62  ;;  %1287 = vst [vmem:[%s2391_s12 + $0x14] sm:$0xf] %v1588_v63  ;;  %v694_v1 = vpop.f32.mrb[20].mxu0  ;;  %v1695_v2 = vpop.f32.mrb[20].mxu1 }
 0x179   : > { %v695_v3 = vadd.f32 %v694_v1, %v2377_v0  ;;  %v862_v4 = vadd.f32 %v1695_v2, %v2431_v39  ;;  %v696_v6 = vpop.f32.mrb[21].mxu0  ;;  %v853_v7 = vpop.f32.mrb[21].mxu1 }
 0x17a   : > { %v697_v8 = vadd.f32 %v696_v6, %v2380_v11  ;;  %v854_v10 = vadd.f32 %v853_v7, %v2431_v39  ;;  %v698_v12 = vpop.f32.mrb[22].mxu0  ;;  %v1696_v13 = vpop.f32.mrb[22].mxu1 }
 0x17b   : > { %v1598_v14 = vpack.c.bf16 %v862_v4, %v862_v4  ;;  %v699_v16 = vadd.f32 %v698_v12, %v2377_v0  ;;  %v865_v18 = vadd.f32 %v1696_v13, %v2431_v39  ;;  %v700_v19 = vpop.f32.mrb[23].mxu0  ;;  %v856_v20 = vpop.f32.mrb[23].mxu1 }
 0x17c   : > { %v1605_v15 = vpack.c.bf16 %v697_v8, %v695_v3  ;;  %v1594_v5 = vpack.c.bf16 %v854_v10, %v854_v10  ;;  %v701_v9 = vadd.f32 %v700_v19, %v2380_v11  ;;  %v857_v17 = vadd.f32 %v856_v20, %v2431_v39 }
 0x17d   : > { %1297 = vst [vmem:[%s2391_s12 + $0x50] sm:$0xf] %v1598_v14  ;;  %v1600_v21 = vpack.c.bf16 %v865_v18, %v865_v18 }
 0x17e   : > { %1304 = vst [vmem:[%s2391_s12 + $0x78] sm:$0xff] %v1605_v15  ;;  %1293 = vst [vmem:[%s2391_s12 + $0x38] sm:$0xf] %v1594_v5  ;;  %v1607_v22 = vpack.c.bf16 %v701_v9, %v699_v16  ;;  %v1596_v23 = vpack.c.bf16 %v857_v17, %v857_v17 }
 0x17f   : > { %1299 = vst [vmem:[%s2391_s12 + $0x5c] sm:$0xf] %v1600_v21 }
 0x180   : > { %1306 = vst [vmem:[%s2391_s12 + $0x84] sm:$0xff] %v1607_v22  ;;  %1295 = vst [vmem:[%s2391_s12 + $0x44] sm:$0xf] %v1596_v23  ;;  %v704_v25 = vpop.f32.mrb[24].mxu0  ;;  %v1699_v26 = vpop.f32.mrb[24].mxu1 }
 0x181   : > { %v705_v27 = vadd.f32 %v704_v25, %v2377_v0  ;;  %v878_v28 = vadd.f32 %v1699_v26, %v2431_v39  ;;  %v706_v29 = vpop.f32.mrb[25].mxu0  ;;  %v869_v30 = vpop.f32.mrb[25].mxu1 }
 0x182   : > { %v707_v31 = vadd.f32 %v706_v29, %v2380_v11  ;;  %v870_v32 = vadd.f32 %v869_v30, %v2431_v39  ;;  %v708_v33 = vpop.f32.mrb[26].mxu0  ;;  %v1700_v34 = vpop.f32.mrb[26].mxu1 }
 0x183   : > { %v1606_v35 = vpack.c.bf16 %v878_v28, %v878_v28  ;;  %v709_v36 = vadd.f32 %v708_v33, %v2377_v0  ;;  %v881_v37 = vadd.f32 %v1700_v34, %v2431_v39  ;;  %v710_v38 = vpop.f32.mrb[27].mxu0  ;;  %v872_v24 = vpop.f32.mrb[27].mxu1 }
 0x184   : > { %v1609_v40 = vpack.c.bf16 %v707_v31, %v705_v27  ;;  %v1602_v43 = vpack.c.bf16 %v870_v32, %v870_v32  ;;  %v711_v44 = vadd.f32 %v710_v38, %v2380_v11  ;;  %v873_v45 = vadd.f32 %v872_v24, %v2431_v39 }
 0x185   : > { %1305 = vst [vmem:[%s2391_s12 + $0x80] sm:$0xf] %v1606_v35  ;;  %v1608_v46 = vpack.c.bf16 %v881_v37, %v881_v37 }
 0x186   : > { %1308 = vst [vmem:[%s2391_s12 + $0x90] sm:$0xff] %v1609_v40  ;;  %1301 = vst [vmem:[%s2391_s12 + $0x68] sm:$0xf] %v1602_v43  ;;  %v1611_v47 = vpack.c.bf16 %v711_v44, %v709_v36  ;;  %v1604_v48 = vpack.c.bf16 %v873_v45, %v873_v45 }
 0x187   : > { %1307 = vst [vmem:[%s2391_s12 + $0x8c] sm:$0xf] %v1608_v46 }
 0x188   : > { %1310 = vst [vmem:[%s2391_s12 + $0x9c] sm:$0xff] %v1611_v47  ;;  %1303 = vst [vmem:[%s2391_s12 + $0x74] sm:$0xf] %v1604_v48  ;;  %v714_v49 = vpop.f32.mrb[28].mxu0  ;;  %v1703_v50 = vpop.f32.mrb[28].mxu1 }
 0x189   : > { %v715_v42 = vadd.f32 %v714_v49, %v2377_v0  ;;  %v894_v51 = vadd.f32 %v1703_v50, %v2431_v39  ;;  %v716_v52 = vpop.f32.mrb[29].mxu0  ;;  %v885_v53 = vpop.f32.mrb[29].mxu1 }
 0x18a   : > { %v717_v54 = vadd.f32 %v716_v52, %v2380_v11  ;;  %v886_v55 = vadd.f32 %v885_v53, %v2431_v39  ;;  %v718_v56 = vpop.f32.mrb[30].mxu0  ;;  %v1704_v57 = vpop.f32.mrb[30].mxu1 }
 0x18b   : > { %v1614_v41 = vpack.c.bf16 %v894_v51, %v894_v51  ;;  %v719_v58 = vadd.f32 %v718_v56, %v2377_v0  ;;  %v897_v59 = vadd.f32 %v1704_v57, %v2431_v39  ;;  %v720_v60 = vpop.f32.mrb[31].mxu0  ;;  %v888_v61 = vpop.f32.mrb[31].mxu1 }
 0x18c   : > { %v1613_v62 = vpack.c.bf16 %v717_v54, %v715_v42  ;;  %v1610_v63 = vpack.c.bf16 %v886_v55, %v886_v55  ;;  %v721_v1 = vadd.f32 %v720_v60, %v2380_v11  ;;  %v889_v2 = vadd.f32 %v888_v61, %v2431_v39 }
 0x18d   : > { %1313 = vst [vmem:[%s2391_s12 + $0xb0] sm:$0xf] %v1614_v41  ;;  %v1616_v3 = vpack.c.bf16 %v897_v59, %v897_v59 }
 0x18e   : > { %1312 = vst [vmem:[%s2391_s12 + $0xa8] sm:$0xff] %v1613_v62  ;;  %1309 = vst [vmem:[%s2391_s12 + $0x98] sm:$0xf] %v1610_v63  ;;  %v1615_v4 = vpack.c.bf16 %v721_v1, %v719_v58  ;;  %v1612_v6 = vpack.c.bf16 %v889_v2, %v889_v2 }
 0x18f   : > { %1315 = vst [vmem:[%s2391_s12 + $0xbc] sm:$0xf] %v1616_v3 }
 0x190   : > { %1314 = vst [vmem:[%s2391_s12 + $0xb4] sm:$0xff] %v1615_v4  ;;  %1311 = vst [vmem:[%s2391_s12 + $0xa4] sm:$0xf] %v1612_v6  ;;  %v724_v7 = vpop.f32.mrb[32].mxu0  ;;  %v1707_v8 = vpop.f32.mrb[32].mxu1 }
 0x191   : > { %v725_v10 = vadd.f32 %v724_v7, %v2377_v0  ;;  %v910_v12 = vadd.f32 %v1707_v8, %v2431_v39  ;;  %v726_v13 = vpop.f32.mrb[33].mxu0  ;;  %v901_v14 = vpop.f32.mrb[33].mxu1 }
 0x192   : > { %v727_v16 = vadd.f32 %v726_v13, %v2380_v11  ;;  %v902_v18 = vadd.f32 %v901_v14, %v2431_v39  ;;  %v728_v19 = vpop.f32.mrb[34].mxu0  ;;  %v1708_v20 = vpop.f32.mrb[34].mxu1 }
 0x193   : > { %v1622_v15 = vpack.c.bf16 %v910_v12, %v910_v12  ;;  %v729_v5 = vadd.f32 %v728_v19, %v2377_v0  ;;  %v913_v9 = vadd.f32 %v1708_v20, %v2431_v39  ;;  %v730_v17 = vpop.f32.mrb[35].mxu0  ;;  %v904_v21 = vpop.f32.mrb[35].mxu1 }
 0x194   : > { %v1617_v22 = vpack.c.bf16 %v727_v16, %v725_v10  ;;  %v1618_v23 = vpack.c.bf16 %v902_v18, %v902_v18  ;;  %v731_v25 = vadd.f32 %v730_v17, %v2380_v11  ;;  %v905_v26 = vadd.f32 %v904_v21, %v2431_v39 }
 0x195   : > { %1321 = vst [vmem:[%s2391_s12 + $0xe0] sm:$0xf] %v1622_v15  ;;  %v1624_v27 = vpack.c.bf16 %v913_v9, %v913_v9 }
 0x196   : > { %1316 = vst [vmem:[%s2391_s12 + $0xc0] sm:$0xff] %v1617_v22  ;;  %1317 = vst [vmem:[%s2391_s12 + $0xc8] sm:$0xf] %v1618_v23  ;;  %v1619_v28 = vpack.c.bf16 %v731_v25, %v729_v5  ;;  %v1620_v29 = vpack.c.bf16 %v905_v26, %v905_v26 }
 0x197   : > { %1323 = vst [vmem:[%s2391_s12 + $0xec] sm:$0xf] %v1624_v27 }
 0x198   : > { %1318 = vst [vmem:[%s2391_s12 + $0xcc] sm:$0xff] %v1619_v28  ;;  %1319 = vst [vmem:[%s2391_s12 + $0xd4] sm:$0xf] %v1620_v29  ;;  %v734_v30 = vpop.f32.mrb[36].mxu0  ;;  %v1711_v31 = vpop.f32.mrb[36].mxu1 }
 0x199   : > { %v735_v32 = vadd.f32 %v734_v30, %v2377_v0  ;;  %v926_v33 = vadd.f32 %v1711_v31, %v2431_v39  ;;  %v736_v34 = vpop.f32.mrb[37].mxu0  ;;  %v917_v35 = vpop.f32.mrb[37].mxu1 }
 0x19a   : > { %v737_v36 = vadd.f32 %v736_v34, %v2380_v11  ;;  %v918_v37 = vadd.f32 %v917_v35, %v2431_v39  ;;  %v738_v38 = vpop.f32.mrb[38].mxu0  ;;  %v1712_v24 = vpop.f32.mrb[38].mxu1 }
 0x19b   : > { %v1630_v40 = vpack.c.bf16 %v926_v33, %v926_v33  ;;  %v739_v43 = vadd.f32 %v738_v38, %v2377_v0  ;;  %v929_v44 = vadd.f32 %v1712_v24, %v2431_v39  ;;  %v740_v45 = vpop.f32.mrb[39].mxu0  ;;  %v920_v46 = vpop.f32.mrb[39].mxu1 }
 0x19c   : > { %v1621_v47 = vpack.c.bf16 %v737_v36, %v735_v32  ;;  %v1626_v48 = vpack.c.bf16 %v918_v37, %v918_v37  ;;  %v741_v49 = vadd.f32 %v740_v45, %v2380_v11  ;;  %v921_v50 = vadd.f32 %v920_v46, %v2431_v39 }
 0x19d   : > { %1329 = vst [vmem:[%s2391_s12 + $0x110] sm:$0xf] %v1630_v40  ;;  %v1632_v42 = vpack.c.bf16 %v929_v44, %v929_v44 }
 0x19e   : > { %1320 = vst [vmem:[%s2391_s12 + $0xd8] sm:$0xff] %v1621_v47  ;;  %1325 = vst [vmem:[%s2391_s12 + $0xf8] sm:$0xf] %v1626_v48  ;;  %v1623_v51 = vpack.c.bf16 %v741_v49, %v739_v43  ;;  %v1628_v52 = vpack.c.bf16 %v921_v50, %v921_v50 }
 0x19f   : > { %1331 = vst [vmem:[%s2391_s12 + $0x11c] sm:$0xf] %v1632_v42 }
 0x1a0   : > { %1322 = vst [vmem:[%s2391_s12 + $0xe4] sm:$0xff] %v1623_v51  ;;  %1327 = vst [vmem:[%s2391_s12 + $0x104] sm:$0xf] %v1628_v52  ;;  %v744_v53 = vpop.f32.mrb[40].mxu0  ;;  %v1715_v54 = vpop.f32.mrb[40].mxu1 }
 0x1a1   : > { %v745_v55 = vadd.f32 %v744_v53, %v2377_v0  ;;  %v942_v56 = vadd.f32 %v1715_v54, %v2431_v39  ;;  %v746_v57 = vpop.f32.mrb[41].mxu0  ;;  %v933_v41 = vpop.f32.mrb[41].mxu1 }
 0x1a2   : > { %v747_v58 = vadd.f32 %v746_v57, %v2380_v11  ;;  %v934_v59 = vadd.f32 %v933_v41, %v2431_v39  ;;  %v748_v60 = vpop.f32.mrb[42].mxu0  ;;  %v1716_v61 = vpop.f32.mrb[42].mxu1 }
 0x1a3   : > { %v1638_v62 = vpack.c.bf16 %v942_v56, %v942_v56  ;;  %v749_v63 = vadd.f32 %v748_v60, %v2377_v0  ;;  %v945_v1 = vadd.f32 %v1716_v61, %v2431_v39  ;;  %v750_v2 = vpop.f32.mrb[43].mxu0  ;;  %v936_v3 = vpop.f32.mrb[43].mxu1 }
 0x1a4   : > { %v1625_v4 = vpack.c.bf16 %v747_v58, %v745_v55  ;;  %v1634_v6 = vpack.c.bf16 %v934_v59, %v934_v59  ;;  %v751_v7 = vadd.f32 %v750_v2, %v2380_v11  ;;  %v937_v8 = vadd.f32 %v936_v3, %v2431_v39 }
 0x1a5   : > { %1337 = vst [vmem:[%s2391_s12 + $0x140] sm:$0xf] %v1638_v62  ;;  %v1640_v10 = vpack.c.bf16 %v945_v1, %v945_v1 }
 0x1a6   : > { %1324 = vst [vmem:[%s2391_s12 + $0xf0] sm:$0xff] %v1625_v4  ;;  %1333 = vst [vmem:[%s2391_s12 + $0x128] sm:$0xf] %v1634_v6  ;;  %v1627_v12 = vpack.c.bf16 %v751_v7, %v749_v63  ;;  %v1636_v13 = vpack.c.bf16 %v937_v8, %v937_v8 }
 0x1a7   : > { %1339 = vst [vmem:[%s2391_s12 + $0x14c] sm:$0xf] %v1640_v10 }
 0x1a8   : > { %1326 = vst [vmem:[%s2391_s12 + $0xfc] sm:$0xff] %v1627_v12  ;;  %1335 = vst [vmem:[%s2391_s12 + $0x134] sm:$0xf] %v1636_v13  ;;  %v754_v14 = vpop.f32.mrb[44].mxu0  ;;  %v1719_v16 = vpop.f32.mrb[44].mxu1 }
 0x1a9   : > { %v755_v18 = vadd.f32 %v754_v14, %v2377_v0  ;;  %v958_v19 = vadd.f32 %v1719_v16, %v2431_v39  ;;  %v756_v20 = vpop.f32.mrb[45].mxu0  ;;  %v949_v15 = vpop.f32.mrb[45].mxu1 }
 0x1aa   : > { %v757_v5 = vadd.f32 %v756_v20, %v2380_v11  ;;  %v950_v9 = vadd.f32 %v949_v15, %v2431_v39  ;;  %v758_v17 = vpop.f32.mrb[46].mxu0  ;;  %v1720_v21 = vpop.f32.mrb[46].mxu1 }
 0x1ab   : > { %v1646_v22 = vpack.c.bf16 %v958_v19, %v958_v19  ;;  %v759_v23 = vadd.f32 %v758_v17, %v2377_v0  ;;  %v961_v25 = vadd.f32 %v1720_v21, %v2431_v39  ;;  %v760_v26 = vpop.f32.mrb[47].mxu0  ;;  %v952_v27 = vpop.f32.mrb[47].mxu1 }
 0x1ac   : > { %v1629_v28 = vpack.c.bf16 %v757_v5, %v755_v18  ;;  %v1642_v29 = vpack.c.bf16 %v950_v9, %v950_v9  ;;  %v761_v30 = vadd.f32 %v760_v26, %v2380_v11  ;;  %v953_v31 = vadd.f32 %v952_v27, %v2431_v39 }
 0x1ad   : > { %1345 = vst [vmem:[%s2391_s12 + $0x170] sm:$0xf] %v1646_v22  ;;  %v1648_v32 = vpack.c.bf16 %v961_v25, %v961_v25 }
 0x1ae   : > { %1328 = vst [vmem:[%s2391_s12 + $0x108] sm:$0xff] %v1629_v28  ;;  %1341 = vst [vmem:[%s2391_s12 + $0x158] sm:$0xf] %v1642_v29  ;;  %v1631_v0 = vpack.c.bf16 %v761_v30, %v759_v23  ;;  %v1644_v33 = vpack.c.bf16 %v953_v31, %v953_v31 }
 0x1af   : > { %1347 = vst [vmem:[%s2391_s12 + $0x17c] sm:$0xf] %v1648_v32 }
 0x1b0   : > { %1330 = vst [vmem:[%s2391_s12 + $0x114] sm:$0xff] %v1631_v0  ;;  %1343 = vst [vmem:[%s2391_s12 + $0x164] sm:$0xf] %v1644_v33 }
 0x1b1   : > { %1922 = shalt.err (!%p1919_p9)
}
 0x1b2   : > { %s1923_s11 = scalar_lea.hbm %s2549_s26, 6144  ;;  %s1927_s8 = scalar_lea.hbm %s2610_s5, 12288 }
 0x1b3   : > { %p1924_p1 = scmp.ne.s32.totalorder %s2549_s26, %s1923_s11  ;;  %p1928_p7 = scmp.lt.u32.totalorder %s2549_s26, %s2610_s5 }
 0x1b4   : > { %p1929_p13 = scmp.lt.u32.totalorder %s1927_s8, %s1923_s11  ;;  %p1931_p6 = scmp.lt.u32.totalorder %s1923_s11, %s2549_s26 }
 0x1b5   : > { %p1925_p2 = pnand %p1924_p1, %p2133_p10 }
 0x1b6   : > { %p1930_p4 = por %p1929_p13, %p1928_p7 }
 0x1b7   : > { %p1926_p3 = pneg %p1925_p2 }
 0x1b8   : > { %p1932_p8 = por %p1931_p6, %p1930_p4 }
 0x1ba   : > { %p1933_p12 = pnand %p1932_p8, %p1926_p3 }
 0x1bc   : > { %1936 = shalt.err (!%p1933_p12)
}
 0x1bd   : > { %s2005_s21 = smov 192   ;;  %s2006_s27 = smov 12  }
 0x1be   : > { %1745 = dma.vmem_to_hbm [thread:$0]  (%p2133_p10), %s2551_s7, 6144, %s2549_s26, %s1349_s28, %s2005_s21, %s2005_s21, %s2006_s27  }
 0x1bf PF: > { %s1380_s30 = sand.u32 1, %s1975_s18   ;;  %p2628_p11 = scmp.ne.s32.totalorder %s2618_s29, 0 }
 0x1c0   : > { %p2629_p0 = scmp.ge.s32.totalorder %s1995_s23, 2  ;;  %s1381_s25 = scalar_lea.sflag [#allocation4], %s1380_s30 }
 0x1c2   : > { %p1756_p5 = pnand %p2629_p0, %p2628_p11 }
 0x1c4   : > { %1970 = dma.done.wait (!%p1756_p5), %s1381_s25, 6144  }
 0x1c5   : > { %1972 = vsyncadd (!%p1756_p5), %s1381_s25, 4294961152  ;;  %s22_s23 = sadd.s32 1, %s1995_s23   ;;  %s2630_s18 = smov %s1979_s19 }
 0x1c6   : > { %p19_p9 = scmp.ge.s32.totalorder %s22_s23, 4   ;;  %s2631_s19 = smov %s1983_s20 }
 0x1c7   : > { %s2632_s20 = smov %s2142_s15  ;;  %s2633_s21 = smov %s1991_s22 }
 0x1c8   : > { %s2634_s22 = smov %s2636_s9  ;;  %21 = sbr.rel (!%p19_p9) target bundleno = 7 (0x7), region = 95 }
 0x1cf   :  { %1386 = vsyncpa [#allocation3], 1 }
 0x1d0   :  { %1388 = vsyncpa [#allocation3 + $0x1], 1 }
 0x1d1   :  { %1389 = vsyncpa [#allocation6], 1 }
 0x1d2   :  { %1390 = vsyncpa [#allocation4], 1 }
 0x1d3   :  { %1392 = vsyncpa [#allocation4 + $0x1], 1 }

</bundles_post_ra>
